<compile_context>
chip_gen: v7x
topology: tpu7x:2x2x1
jax: 0.10.0
libtpu: 0.0.40
codegen_flags: <defaults>
</compile_context>

<pallas_src>
import functools

import jax
import jax.numpy as jnp
from jax.experimental import pallas as pl
from jax.experimental.pallas import tpu as pltpu


# ----------------------------------------------------------------------------
# Pallas kernel #1: reader (PillarFeatureNet-style), tiled over pillars
# ----------------------------------------------------------------------------
def _reader_kernel(f_ref, w_ref, b_ref, o_ref, *, points_per_pillar):
    """Per-point Linear + ReLU, then max-pool over the points of each pillar.

    f_ref: (P, tv, Cin) bf16 (point-major)   w_ref: (Cin, Cout) bf16
    b_ref: (1, Cout) f32                     o_ref: (tv, Cout) bf16
    """
    P = points_per_pillar
    _, tv, cin = f_ref.shape
    # one MXU dot for all P*tv points in this pillar tile (reshape only collapses
    # leading dims -> free relayout)
    y = jnp.dot(f_ref[...].reshape(P * tv, cin), w_ref[...],
                preferred_element_type=jnp.float32)
    y = jnp.maximum(y + b_ref[...], 0.0)           # bias + ReLU in f32
    # TODO(synk): PyTorch PillarFeatureNet masks padded points before the max-pool;
    # the synthetic pre_process below only produces valid points.
    acc = y[0:tv, :]
    for p in range(1, P):                           # P-1 aligned vector maxes
        acc = jnp.maximum(acc, y[p * tv:(p + 1) * tv, :])
    o_ref[...] = acc.astype(o_ref.dtype)


def pallas_reader(features, w, b):
    """(V, P, Cin) pillar point features -> (V, Cout) pillar features (bf16)."""
    V, P, Cin = features.shape
    Cout = w.shape[1]
    # point-major layout so the per-pillar max is over contiguous, tile-aligned slabs
    x = jnp.transpose(features, (1, 0, 2)).astype(jnp.bfloat16)      # (P, V, Cin)
    # pillar tile bounds the f32 intermediate so ~30k-pillar workloads still
    # double-buffer inside the default scoped VMEM (v5e: 16 MiB); demo = full extent
    tv = next((c for c in (4096, 2048, 1024, 512) if V % c == 0), V)
    return pl.pallas_call(
        functools.partial(_reader_kernel, points_per_pillar=P),
        out_shape=jax.ShapeDtypeStruct((V, Cout), jnp.bfloat16),
        grid_spec=pltpu.PrefetchScalarGridSpec(
            num_scalar_prefetch=0,
            grid=(V // tv,),
            in_specs=[
                pl.BlockSpec((P, tv, Cin), lambda i: (0, i, 0)),
                pl.BlockSpec((Cin, Cout), lambda i: (0, 0)),
                pl.BlockSpec((1, Cout), lambda i: (0, 0)),
            ],
            out_specs=pl.BlockSpec((tv, Cout), lambda i: (i, 0)),
        ),
        compiler_params=pltpu.CompilerParams(dimension_semantics=("parallel",)),
    )(x, w.astype(jnp.bfloat16), b.reshape(1, Cout).astype(jnp.float32))


# ----------------------------------------------------------------------------
# Pallas kernel #2: fused backbone 3x3 conv + neck 1x1 + ALL decoder heads
# ----------------------------------------------------------------------------
def _bev_tail_kernel(x3_ref, w3_ref, bbb_ref, wnt_ref, bn_ref, wht_ref, bh_ref,
                     o_ref, acc_ref, *, th, W):
    """conv3x3+ReLU -> neck 1x1+ReLU -> all heads, one halo H-tile of one sample.

    x3_ref : (1, (th+2)*W, 3C) bf16   halo slab, dw taps pre-concatenated, rows
                                      flattened (h, w) row-major
    w3_ref : (3, 3C, Cbb) bf16        conv weights grouped by dh tap
    bbb_ref: (1, Cbb) f32
    wnt_ref: (Cn, Cbb) bf16           neck weight, pre-transposed (channels-first)
    bn_ref : (Cn, 1) f32
    wht_ref: (Ch, Cn) bf16            all heads' weights, pre-transposed + concat
    bh_ref : (Ch, 1) f32
    o_ref  : (1, Ch, th*W) bf16       lane-dense NCHW output slab
    acc_ref: (th*W, Cbb) f32          conv accumulator (VMEM scratch)
    """
    HW = th * W
    # 3x3 conv = 3 K=3C dots; each dh shift is a sublane-aligned offset of dh*W rows
    acc_ref[...] = jnp.dot(x3_ref[0, 0:HW, :], w3_ref[0],
                           preferred_element_type=jnp.float32)
    for dh in (1, 2):
        acc_ref[...] += jnp.dot(x3_ref[0, dh * W:dh * W + HW, :], w3_ref[dh],
                                preferred_element_type=jnp.float32)
    y_bb = jnp.maximum(acc_ref[...] + bbb_ref[...], 0.0)         # conv bias + ReLU
    # channels-first tail: one small transpose, then lane-dense dots and store
    y_cf = y_bb.astype(jnp.bfloat16).T                            # (Cbb, th*W)
    y_n = jnp.dot(wnt_ref[...], y_cf, preferred_element_type=jnp.float32)
    y_n = jnp.maximum(y_n + bn_ref[...], 0.0)                     # neck 1x1 + ReLU
    h = jnp.dot(wht_ref[...], y_n.astype(jnp.bfloat16),
                preferred_element_type=jnp.float32) + bh_ref[...]
    o_ref[0] = h.astype(o_ref.dtype)                              # (Ch, th*W) store


def pallas_bev_tail(canvas, w3, b_bb, wn_t, bn, wh_t, bh):
    """canvas (B, H, W, C) bf16 -> (B, Ch, H*W) bf16 (all heads, NCHW-flattened)."""
    B, H, W, C = canvas.shape
    Cbb = w3.shape[-1]
    Cn = wn_t.shape[0]
    Ch = wh_t.shape[0]
    # H-tile: th<=64 keeps slab + f32 acc + out ~20 MiB at 512x512 BEV (v7x-safe)
    th = H if H <= 64 else next((c for c in (64, 32, 16, 8) if H % c == 0), H)
    nh = H // th
    # wrapper-side packing (cheap XLA glue): pad, concat 3 dw taps along channels,
    # cut overlapping halo h-tile slabs, flatten (h, w) row-major.
    xp = jnp.pad(canvas, ((0, 0), (1, 1), (1, 1), (0, 0)))            # (B,H+2,W+2,C)
    x3 = jnp.concatenate([xp[:, :, dw:dw + W, :] for dw in range(3)],
                         axis=-1)                                     # (B,H+2,W,3C)
    slabs = jnp.stack([x3[:, i * th:i * th + th + 2] for i in range(nh)],
                      axis=1)                                         # (B,nh,th+2,W,3C)
    slabs = slabs.reshape(B * nh, (th + 2) * W, 3 * C)
    return pl.pallas_call(
        functools.partial(_bev_tail_kernel, th=th, W=W),
        out_shape=jax.ShapeDtypeStruct((B, Ch, H * W), jnp.bfloat16),
        grid_spec=pltpu.PrefetchScalarGridSpec(
            num_scalar_prefetch=0,
            grid=(B, nh),
            in_specs=[
                pl.BlockSpec((1, (th + 2) * W, 3 * C),
                             lambda b, i: (b * nh + i, 0, 0)),
                pl.BlockSpec((3, 3 * C, Cbb), lambda b, i: (0, 0, 0)),
                pl.BlockSpec((1, Cbb), lambda b, i: (0, 0)),
                pl.BlockSpec((Cn, Cbb), lambda b, i: (0, 0)),
                pl.BlockSpec((Cn, 1), lambda b, i: (0, 0)),
                pl.BlockSpec((Ch, Cn), lambda b, i: (0, 0)),
                pl.BlockSpec((Ch, 1), lambda b, i: (0, 0)),
            ],
            out_specs=pl.BlockSpec((1, Ch, th * W), lambda b, i: (b, 0, i)),
            scratch_shapes=[pltpu.VMEM((th * W, Cbb), jnp.float32)],
        ),
        compiler_params=pltpu.CompilerParams(
            dimension_semantics=("parallel", "parallel"),
            vmem_limit_bytes=32 * 1024 * 1024),
    )(slabs,
      w3.astype(jnp.bfloat16),
      b_bb.reshape(1, Cbb).astype(jnp.float32),
      wn_t.astype(jnp.bfloat16),
      bn.reshape(Cn, 1).astype(jnp.float32),
      wh_t.astype(jnp.bfloat16),
      bh.reshape(Ch, 1).astype(jnp.float32))


# ----------------------------------------------------------------------------
# LidarMultiTask (JAX / Pallas version)
# ----------------------------------------------------------------------------
class LidarMultiTaskPallas:
    def __init__(self, feature_map_shape, params, *, num_pillars=16,
                 points_per_pillar=4, is_deploy=False):
        self.feature_map_shape = feature_map_shape   # (W, H, 1)
        self.num_pillars = num_pillars
        self.points_per_pillar = points_per_pillar
        self.is_deploy = is_deploy

        prm = dict(params)
        c_hm = prm["det_hm_w"].shape[1]
        c_box = prm["det_box_w"].shape[1]
        c_seg = prm["seg_w"].shape[1]
        self._head_splits = (c_hm, c_box, c_seg)
        # all decoder heads fused along output channels, pre-transposed to (Ch, Cn)
        prm["heads_w_t"] = jnp.concatenate(
            [prm["det_hm_w"], prm["det_box_w"], prm["seg_w"]], axis=1).T
        prm["heads_b"] = jnp.concatenate(
            [prm["det_hm_b"], prm["det_box_b"], prm["seg_b"]], axis=0)
        # neck weight pre-transposed for the channels-first tail
        prm["neck_w_t"] = prm["neck_w"].T
        # conv weights grouped by dh tap: (9*C, Cbb) -> (3, 3C, Cbb)
        # TODO(synk): real PyTorch (Cout, Cin, 3, 3) conv weights must be permuted to
        # (kh, kw, Cin, Cout)-major before this reshape or the conv is silently wrong.
        c_pillar = prm["reader_w"].shape[1]
        prm["backbone_w3"] = prm["backbone_w"].reshape(3, 3 * c_pillar, -1)
        self.params = prm

    # -- pre_process: synthetic voxelization (glue, deterministic) --
    # TODO(synk): real voxelization is data-dependent host/CPU-style preprocessing.
    def _pre_process(self, points_list):
        W, H, _ = self.feature_map_shape
        V, P = self.num_pillars, self.points_per_pillar
        feats, coords = [], []
        for b, pts in enumerate(points_list):
            pil = pts[: V * P].reshape(V, P, pts.shape[-1])
            mean_xyz = jnp.mean(pil[..., :3], axis=1, keepdims=True)
            offs = pil[..., :3] - mean_xyz
            pad = jnp.zeros(pil.shape[:2] + (1,), pil.dtype)
            feats.append(jnp.concatenate([pil, offs, pad], axis=-1))  # (V, P, 8)
            idx = jnp.arange(V, dtype=jnp.int32)
            coords.append(jnp.stack(
                [jnp.full_like(idx, b),            # batch index
                 jnp.zeros_like(idx),              # z
                 idx % H,                          # y  (unique per sample)
                 (idx * 3 + b) % W],               # x
                axis=-1))
        return jnp.concatenate(feats, axis=0), jnp.concatenate(coords, axis=0)

    # -- scatter: pillar features -> BEV canvas --
    # TODO(synk): data-dependent scatter-by-coordinate kept in plain JAX; for large
    # pillar counts fold it into the reader via scalar-prefetch coords + manual DMA.
    def _scatter(self, pillar_feats, coors, batch_size):
        W, H, _ = self.feature_map_shape
        C = pillar_feats.shape[-1]
        canvas = jnp.zeros((batch_size, H, W, C), pillar_feats.dtype)
        return canvas.at[coors[:, 0], coors[:, 2], coors[:, 3]].set(pillar_feats)

    # -- decoders (output already NCHW from the fused kernel; just slice) --
    def _det_decoder(self, head_out, example):
        c_hm, c_box, _ = self._head_splits
        hm = head_out[:, :c_hm]
        box = head_out[:, c_hm:c_hm + c_box]
        return [hm, box], {"lidar_det": {"heatmap": hm, "box": box}}

    def _seg_decoder(self, head_out, example):
        c_hm, c_box, c_seg = self._head_splits
        seg = head_out[:, c_hm + c_box:c_hm + c_box + c_seg]
        return [seg], {"lidar_seg": seg}

    @staticmethod
    def _update_res(pred, result, preds, results):
        if preds is None:
            preds = list(pred)
        else:
            preds.extend(pred)
        if result:
            results.update(result)
        return preds, results

    # -- forward --
    def forward(self, example):
        p = self.params
        W, H, _ = self.feature_map_shape
        features, coors = self._pre_process(example["points"])
        batch_size = len(example["points"])

        # reader (Pallas #1): pillar-tiled MXU dot + max-pool over points
        pillar_feats = pallas_reader(features, p["reader_w"], p["reader_b"])

        # scatter to BEV canvas (bf16 halves the conv-input HBM traffic)
        canvas = self._scatter(pillar_feats, coors, batch_size)          # (B,H,W,C)

        # fused backbone 3x3 + neck + all decoder heads (Pallas #2), NCHW output
        head_out = pallas_bev_tail(canvas, p["backbone_w3"], p["backbone_b"],
                                   p["neck_w_t"], p["neck_b"],
                                   p["heads_w_t"], p["heads_b"])         # (B,Ch,HW)
        head_out = head_out.reshape(batch_size, -1, H, W)                # NCHW

        preds, results = None, {}
        for decoder in (self._det_decoder, self._seg_decoder):
            pred, result = decoder(head_out, example)
            preds, results = self._update_res(pred, result, preds, results)

        if self.is_deploy:
            return preds
        return preds, results


# ----------------------------------------------------------------------------
# Pure-JAX f32 reference (for tolerance checking the bf16 Pallas path)
# ----------------------------------------------------------------------------
def reference_heads(model, example):
    p = model.params
    W_, H_, _ = model.feature_map_shape
    features, coors = model._pre_process(example["points"])
    B = len(example["points"])
    y = jax.nn.relu(features @ p["reader_w"] + p["reader_b"])
    pillar = jnp.max(y, axis=1)
    C = pillar.shape[-1]
    canvas = jnp.zeros((B, H_, W_, C), jnp.float32)
    canvas = canvas.at[coors[:, 0], coors[:, 2], coors[:, 3]].set(pillar)
    w9 = p["backbone_w"].reshape(3, 3, C, -1)
    xp = jnp.pad(canvas, ((0, 0), (1, 1), (1, 1), (0, 0)))
    acc = 0.0
    for dh in range(3):
        for dw in range(3):
            acc = acc + jnp.einsum("bhwc,cd->bhwd",
                                   xp[:, dh:dh + H_, dw:dw + W_, :], w9[dh, dw])
    y = jax.nn.relu(acc + p["backbone_b"])
    y = jax.nn.relu(jnp.einsum("bhwc,cd->bhwd", y, p["neck_w"]) + p["neck_b"])
    h = jnp.einsum("bhwc,cd->bhwd", y, p["heads_w_t"].T) + p["heads_b"]
    return jnp.transpose(h, (0, 3, 1, 2))                                # NCHW


# ----------------------------------------------------------------------------
# Deterministic parameter construction
# ----------------------------------------------------------------------------
def make_params(key):
    c_in, c_pillar, c_backbone, c_neck = 8, 32, 32, 64
    c_hm, c_box, c_seg = 2, 8, 4
    ks = jax.random.split(key, 8)

    def w(k, shape, fan_in):
        return jax.random.normal(k, shape, jnp.float32) / jnp.sqrt(fan_in)

    return {
        "reader_w": w(ks[0], (c_in, c_pillar), c_in),
        "reader_b": jnp.zeros((c_pillar,), jnp.float32),
        "backbone_w": w(ks[1], (9 * c_pillar, c_backbone), 9 * c_pillar),
        "backbone_b": jnp.zeros((c_backbone,), jnp.float32),
        "neck_w": w(ks[2], (c_backbone, c_neck), c_backbone),
        "neck_b": jnp.zeros((c_neck,), jnp.float32),
        "det_hm_w": w(ks[3], (c_neck, c_hm), c_neck),
        "det_hm_b": jnp.full((c_hm,), -2.19, jnp.float32),
        "det_box_w": w(ks[4], (c_neck, c_box), c_neck),
        "det_box_b": jnp.zeros((c_box,), jnp.float32),
        "seg_w": w(ks[5], (c_neck, c_seg), c_neck),
        "seg_b": jnp.zeros((c_seg,), jnp.float32),
    }


# ----------------------------------------------------------------------------
# Main
# ----------------------------------------------------------------------------
if __name__ == "__main__":
    key = jax.random.PRNGKey(0)
    k_pts, k_par = jax.random.split(key)

    # batch of 2 point clouds, 64 points each, (x, y, z, intensity)
    pts = jax.random.uniform(k_pts, (2, 64, 4), jnp.float32)
    example = {"points": [pts[0], pts[1]]}

    feature_map_shape = (16, 16, 1)   # (W, H, 1)
    model = LidarMultiTaskPallas(feature_map_shape, make_params(k_par),
                                 num_pillars=16, points_per_pillar=4,
                                 is_deploy=False)

    preds, results = model.forward(example)
    preds = [jax.block_until_ready(p) for p in preds]
    jax.block_until_ready(results["lidar_seg"])

    # sanity: 3 head outputs in NCHW at (B=2, C, H=16, W=16)
    assert preds[0].shape == (2, 2, 16, 16)
    assert preds[1].shape == (2, 8, 16, 16)
    assert preds[2].shape == (2, 4, 16, 16)
    assert all(bool(jnp.isfinite(p).all()) for p in preds)

    # tolerance check against a pure-JAX f32 reference (bf16 MXU path)
    ref = reference_heads(model, example)
    got = jnp.concatenate([preds[0], preds[1], preds[2]], axis=1).astype(jnp.float32)
    max_err = float(jnp.max(jnp.abs(got - ref)))
    assert max_err < 0.1, f"max abs err vs f32 reference: {max_err}"

    print("KERNEL_OK")
</pallas_src>

<mosaic_0001>
module attributes {stable_mosaic.version = 11 : i64} {
  func.func @_reader_kernel(%arg0: i32, %arg1: memref<4x32x8xbf16, #tpu.memory_space<vmem>>, %arg2: memref<8x32xbf16, #tpu.memory_space<vmem>>, %arg3: memref<1x32xf32, #tpu.memory_space<vmem>>, %arg4: memref<32x32xbf16, #tpu.memory_space<vmem>>) attributes {dimension_semantics = [#tpu.dimension_semantics<parallel>], iteration_bounds = array<i64: 1>, scalar_prefetch = 0 : i64, scratch_operands = 0 : i64, tpu.core_type = #tpu.core_type<tc>, window_params = [{transform_indices = @transform_0, window_bounds = array<i64: 4, 32, 8>}, {pipeline_mode = #tpu.pipeline_mode<synchronous>, transform_indices = @transform_1, window_bounds = array<i64: 8, 32>}, {pipeline_mode = #tpu.pipeline_mode<synchronous>, transform_indices = @transform_2, window_bounds = array<i64: 1, 32>}, {transform_indices = @transform_3, window_bounds = array<i64: 32, 32>}]} {
    %c0 = arith.constant 0 : index
    %c0_0 = arith.constant 0 : index
    %c0_1 = arith.constant 0 : index
    %0 = vector.load %arg1[%c0, %c0_0, %c0_1] : memref<4x32x8xbf16, #tpu.memory_space<vmem>>, vector<4x32x8xbf16>
    %1 = vector.shape_cast %0 : vector<4x32x8xbf16> to vector<128x8xbf16>
    %c0_2 = arith.constant 0 : index
    %c0_3 = arith.constant 0 : index
    %2 = vector.load %arg2[%c0_2, %c0_3] : memref<8x32xbf16, #tpu.memory_space<vmem>>, vector<8x32xbf16>
    %cst = arith.constant dense<0.000000e+00> : vector<128x32xf32>
    %3 = tpu.matmul %1, %2, %cst {dimension_numbers = #tpu.dot_dimension_numbers<[1], [0], [0], [1], [0, 0, 1, 1], [], []>} : vector<128x8xbf16>, vector<8x32xbf16>, vector<128x32xf32> -> vector<128x32xf32>
    %c0_4 = arith.constant 0 : index
    %c0_5 = arith.constant 0 : index
    %4 = vector.load %arg3[%c0_4, %c0_5] : memref<1x32xf32, #tpu.memory_space<vmem>>, vector<1x32xf32>
    %5 = vector.broadcast %4 : vector<1x32xf32> to vector<128x32xf32>
    %6 = arith.addf %3, %5 : vector<128x32xf32>
    %cst_6 = arith.constant 0.000000e+00 : f32
    %7 = vector.broadcast %cst_6 : f32 to vector<128x32xf32>
    %8 = arith.maximumf %6, %7 : vector<128x32xf32>
    %9 = vector.extract_strided_slice %8 {offsets = [0, 0], sizes = [32, 32], strides = [1, 1]} : vector<128x32xf32> to vector<32x32xf32>
    %10 = vector.extract_strided_slice %8 {offsets = [32, 0], sizes = [32, 32], strides = [1, 1]} : vector<128x32xf32> to vector<32x32xf32>
    %11 = arith.maximumf %9, %10 : vector<32x32xf32>
    %12 = vector.extract_strided_slice %8 {offsets = [64, 0], sizes = [32, 32], strides = [1, 1]} : vector<128x32xf32> to vector<32x32xf32>
    %13 = arith.maximumf %11, %12 : vector<32x32xf32>
    %14 = vector.extract_strided_slice %8 {offsets = [96, 0], sizes = [32, 32], strides = [1, 1]} : vector<128x32xf32> to vector<32x32xf32>
    %15 = arith.maximumf %13, %14 : vector<32x32xf32>
    %16 = arith.truncf %15 : vector<32x32xf32> to vector<32x32xbf16>
    %c0_7 = arith.constant 0 : index
    %c0_8 = arith.constant 0 : index
    %17 = vector.load %arg4[%c0_7, %c0_8] : memref<32x32xbf16, #tpu.memory_space<vmem>>, vector<32x32xbf16>
    tpu.vector_store %arg4[%c0_7, %c0_8], %16 {strides = array<i32>} : memref<32x32xbf16, #tpu.memory_space<vmem>>, vector<32x32xbf16>,
    return
  }
  func.func @transform_0(%arg0: i32) -> (i32, i32, i32) {
    %c0_i32 = arith.constant 0 : i32
    %c0_i32_0 = arith.constant 0 : i32
    %c0_i32_1 = arith.constant 0 : i32
    return %c0_i32, %arg0, %c0_i32_0 : i32, i32, i32
  }
  func.func @transform_1(%arg0: i32) -> (i32, i32) {
    %c0_i32 = arith.constant 0 : i32
    %c0_i32_0 = arith.constant 0 : i32
    %c0_i32_1 = arith.constant 0 : i32
    return %c0_i32, %c0_i32_0 : i32, i32
  }
  func.func @transform_2(%arg0: i32) -> (i32, i32) {
    %c0_i32 = arith.constant 0 : i32
    %c0_i32_0 = arith.constant 0 : i32
    %c0_i32_1 = arith.constant 0 : i32
    return %c0_i32, %c0_i32_0 : i32, i32
  }
  func.func @transform_3(%arg0: i32) -> (i32, i32) {
    %c0_i32 = arith.constant 0 : i32
    %c0_i32_0 = arith.constant 0 : i32
    return %arg0, %c0_i32 : i32, i32
  }
}

</mosaic_0001>

<bundles_post_ra>
// kernel: tpu_custom_call.1
= control target key start
LH: loop header
LB: loop body
LE: loop exit
PB: predicated region body
PF: predicated region fallthrough
CT: control target
= control target key end

     0   :  { %vm105_vm0 = vcmask 1043456   ;;  %vm80_vm1 = vcmask 64512   ;;  %s439_s0 = inlined_call_operand.vmem [shape: bf16[4,32,8], index: 0, kind: input, shape index: {}]   ;;  %s440_s1 = inlined_call_operand.vmem [shape: bf16[8,32], index: 1, kind: input, shape index: {}]   ;;  %s441_s2 = inlined_call_operand.vmem [shape: f32[1,32], index: 2, kind: input, shape index: {}]   ;;  %s442_s3 = inlined_call_operand.hbm [shape: bf16[32,32], index: 3, kind: output, shape index: {}]  }
   0x1   :  { %v32_v0 = vld [vmem:[%s440_s1] sm:$0xf]  ;;  %v331_v3 = vld [vmem:[%s439_s0 + $0x8] sm:$0xff]   ;;  %v334_v6 = vld [vmem:[%s439_s0 + $0x10] sm:$0xff]  }
   0x2   :  { %v330_v1 = vld [vmem:[%s439_s0] sm:$0xff]   ;;  %325 = vmatprep.subr.msk.bf16.mxu0 %vm105_vm0, %v32_v0  ;;  %326 = vmatprep.subr.msk.bf16.mxu1 %vm105_vm0, %v32_v0  ;;  %v107_v2 = vsel %vm105_vm0, %v32_v0, 0  ;;  %v333_v5 = vld [vmem:[%s439_s0 + $0x28] sm:$0xff]   ;;  %v336_v7 = vld [vmem:[%s439_s0 + $0x30] sm:$0xff]  }
   0x3   :  { %306 = vmatpush3.bf16.msra.mxu0 %v107_v2  ;;  %324 = vmatpush3.bf16.msra.mxu1 %v107_v2  ;;  %v332_v4 = vld [vmem:[%s439_s0 + $0x20] sm:$0xff]  }
   0x4   :  { %307 = vmatprep.mubr.msk.bf16.mxu0 %vm80_vm1, %v330_v1  ;;  %315 = vmatprep.mubr.msk.bf16.mxu1 %vm80_vm1, %v332_v4 }
   0x6   :  { %308 = vmatmul.mubr.msk.bf16.vlgmr.msra.gmra.mrb[0].mxu0 %vm80_vm1, %v331_v3  ;;  %316 = vmatmul.mubr.msk.bf16.vlgmr.msra.gmra.mrb[0].mxu1 %vm80_vm1, %v333_v5 }
   0x7   :  { %311 = vmatprep.mubr.msk.bf16.mxu0 %vm80_vm1, %v334_v6 }
   0x8   :  { %8 = vsyncpa [#allocation3], 0  ;;  %v335_v8 = vld [vmem:[%s439_s0 + $0x18] sm:$0xff]   ;;  %319 = vmatprep.mubr.msk.bf16.mxu1 %vm80_vm1, %v336_v7  ;;  %v271_v13 = vld [vmem:[%s441_s2] ss:$0 sm:$0xff]  ;;  %vm250_vm2 = vcmask 257024  }
   0x9   :  { %v337_v9 = vld [vmem:[%s439_s0 + $0x38] sm:$0xff]   ;;  %s362_s0 = smov [#allocation2]  }
   0xa   :  { %s260_s2 = sshll.u32 %s362_s0, 4  ;;  %s261_s2 = int_to_ptr.vmem [resolvable:$true] %s260_s2 }
   0xb   :  { %s338_s4 = scalar_lea.vmem %s261_s2, 256  ;;  %p343_p1 = scmp.lt.s32.totalorder %s261_s2, %s261_s2 }
   0xc   :  { %p339_p0 = scmp.ne.s32.totalorder %s261_s2, %s338_s4  ;;  %p344_p2 = scmp.lt.s32.totalorder %s338_s4, %s338_s4 }
   0xe   :  { %312 = vmatmul.mubr.msk.bf16.gmra.mrb[4].mxu0 %vm80_vm1, %v335_v8  ;;  %320 = vmatmul.mubr.msk.bf16.gmra.mrb[4].mxu1 %vm80_vm1, %v337_v9  ;;  %p345_p3 = por %p344_p2, %p343_p1 }
  0x10   :  { %p346_p4 = pnand %p345_p3, %p339_p0 }
  0xd9   :  { %v309_v10 = vpop.f32.mrb[0].mxu0  ;;  %v317_v12 = vpop.f32.mrb[0].mxu1 }
  0xda   :  { %v143_v11 = vpop.f32.mrb[1].mxu0  ;;  %v175_v15 = vpop.f32.mrb[1].mxu1  ;;  %v152_v19 = vadd.f32 %v309_v10, %v271_v13  ;;  %v184_v21 = vadd.f32 %v317_v12, %v271_v13 }
  0xdb   :  { %v310_v14 = vpop.f32.mrb[2].mxu0  ;;  %v318_v17 = vpop.f32.mrb[2].mxu1  ;;  %v144_v20 = vadd.f32 %v271_v13, %v143_v11  ;;  %v176_v23 = vadd.f32 %v271_v13, %v175_v15 }
  0xdc   :  { %v146_v16 = vpop.f32.mrb[3].mxu0  ;;  %v178_v18 = vpop.f32.mrb[3].mxu1  ;;  %v155_v22 = vadd.f32 %v310_v14, %v271_v13  ;;  %v208_v26 = vmax.f32 %v152_v19, 0.0  ;;  %v216_v28 = vmax.f32 %v184_v21, 0.0  ;;  %v187_v33 = vadd.f32 %v318_v17, %v271_v13 }
  0xdd   :  { %v147_v24 = vadd.f32 %v271_v13, %v146_v16  ;;  %v206_v27 = vmax.f32 %v144_v20, 0.0  ;;  %v214_v38 = vmax.f32 %v176_v23, 0.0  ;;  %v179_v45 = vadd.f32 %v271_v13, %v178_v18 }
  0xde   :  { %v209_v32 = vmax.f32 %v155_v22, 0.0  ;;  %v217_v57 = vmax.f32 %v187_v33, 0.0 }
  0xdf   :  { %v207_v44 = vmax.f32 %v147_v24, 0.0  ;;  %v215_v60 = vmax.f32 %v179_v45, 0.0 }
  0xe1   :  { %v313_v25 = vpop.f32.mrb[4].mxu0  ;;  %v321_v31 = vpop.f32.mrb[4].mxu1 }
  0xe2   :  { %v168_v29 = vadd.f32 %v313_v25, %v271_v13  ;;  %v159_v30 = vpop.f32.mrb[5].mxu0  ;;  %v200_v35 = vadd.f32 %v321_v31, %v271_v13  ;;  %v191_v37 = vpop.f32.mrb[5].mxu1 }
  0xe3   :  { %v160_v34 = vadd.f32 %v271_v13, %v159_v30  ;;  %v314_v36 = vpop.f32.mrb[6].mxu0  ;;  %v192_v41 = vadd.f32 %v271_v13, %v191_v37  ;;  %v322_v43 = vpop.f32.mrb[6].mxu1 }
  0xe4   :  { %v212_v39 = vmax.f32 %v168_v29, 0.0  ;;  %v171_v40 = vadd.f32 %v314_v36, %v271_v13  ;;  %v162_v42 = vpop.f32.mrb[7].mxu0  ;;  %v194_v48 = vpop.f32.mrb[7].mxu1  ;;  %v220_v50 = vmax.f32 %v200_v35, 0.0  ;;  %v203_v52 = vadd.f32 %v322_v43, %v271_v13 }
  0xe5   :  { %v210_v46 = vmax.f32 %v160_v34, 0.0  ;;  %v163_v47 = vadd.f32 %v271_v13, %v162_v42  ;;  %v218_v54 = vmax.f32 %v192_v41, 0.0  ;;  %v195_v56 = vadd.f32 %v271_v13, %v194_v48 }
  0xe6   :  { %v224_v49 = vmax.f32 %v208_v26, %v212_v39  ;;  %v213_v51 = vmax.f32 %v171_v40, 0.0  ;;  %v221_v0 = vmax.f32 %v203_v52, 0.0 }
  0xe7   :  { %v222_v53 = vmax.f32 %v206_v27, %v210_v46  ;;  %v211_v55 = vmax.f32 %v163_v47, 0.0  ;;  %v219_v3 = vmax.f32 %v195_v56, 0.0 }
  0xe8   :  { %v228_v58 = vmax.f32 %v224_v49, %v216_v28  ;;  %v225_v59 = vmax.f32 %v209_v32, %v213_v51 }
  0xe9   :  { %v226_v61 = vmax.f32 %v222_v53, %v214_v38  ;;  %v223_v62 = vmax.f32 %v207_v44, %v211_v55 }
  0xea   :  { %v232_v63 = vmax.f32 %v228_v58, %v220_v50  ;;  %v229_v1 = vmax.f32 %v225_v59, %v217_v57 }
  0xeb   :  { %v230_v2 = vmax.f32 %v226_v61, %v218_v54  ;;  %v227_v4 = vmax.f32 %v223_v62, %v215_v60 }
  0xec   :  { %v294_v5 = vpack.c.bf16 %v232_v63, %v232_v63  ;;  %v233_v6 = vmax.f32 %v229_v1, %v221_v0 }
  0xed   :  { %v292_v7 = vpack.c.bf16 %v230_v2, %v230_v2  ;;  %v231_v8 = vmax.f32 %v227_v4, %v219_v3 }
  0xee   :  { %253 = vst.msk [vmem:[#allocation2 + $0x8] sm:$0xf] %vm250_vm2, %v294_v5  ;;  %v295_v9 = vpack.c.bf16 %v233_v6, %v233_v6 }
  0xef   :  { %251 = vst.msk [vmem:[#allocation2] sm:$0xf] %vm250_vm2, %v292_v7  ;;  %v293_v10 = vpack.c.bf16 %v231_v8, %v231_v8 }
  0xf0   :  { %254 = vst.msk [vmem:[#allocation2 + $0xc] sm:$0xf] %vm250_vm2, %v295_v9 }
  0xf1   :  { %252 = vst.msk [vmem:[#allocation2 + $0x4] sm:$0xf] %vm250_vm2, %v293_v10 }
  0xf2   :  { %349 = shalt.err (!%p346_p4)
}
  0xf3   :  { %s350_s7 = scalar_lea.hbm %s442_s3, 256 }
  0xf4   :  { %p351_p5 = scmp.ne.s32.totalorder %s442_s3, %s350_s7  ;;  %p354_p6 = scmp.lt.u32.totalorder %s350_s7, %s442_s3 }
  0xf6   :  { %p356_p7 = pnand %p354_p6, %p351_p5 }
  0xf8   :  { %359 = shalt.err (!%p356_p7)
}
  0xf9   :  { %s363_s12 = smov 64   ;;  %s364_s13 = smov 4  }
  0xfa   :  { %266 = dma.vmem_to_hbm [thread:$0]  %s261_s2, 256, %s442_s3, [#allocation3], %s363_s12, %s363_s12, %s364_s13  }
  0xfb   :  { %360 = dma.done.wait [#allocation3], 256  }
  0xfc   :  { %361 = vsyncadd [#allocation3], 4294967040 }
  0xfd   :  { %270 = vsyncpa [#allocation3], 1 }

</bundles_post_ra>
